<compile_context>
chip_gen: v7x
topology: tpu7x:2x2x1
jax: 0.10.0
libtpu: 0.0.40
codegen_flags: <defaults>
</compile_context>

<pallas_src>
import math

import jax
import jax.numpy as jnp
from jax.experimental import pallas as pl
from jax.experimental.pallas import tpu as pltpu

_IN = 15
_S1, _S2, _S3 = 64, 32, 16
_OUT = 2
_LANE = 128


def _mlp_kernel(x_ref, w1_ref, w2_ref, w3_ref, w4_ref, b_ref, o_ref):
    # x_ref: [15, tb] bf16 (feature-major).  w*_ref: [out, in] bf16.
    # b_ref: [64, 4] f32, column l = layer-(l+1) bias, zero-padded.
    x = x_ref[...]

    b1 = b_ref[:, 0:1]          # [64, 1]
    b2 = b_ref[0:_S2, 1:2]      # [32, 1]
    b3 = b_ref[0:_S3, 2:3]      # [16, 1]
    b4 = b_ref[0:_OUT, 3:4]     # [2, 1]

    # Layer 1 + ReLU: [64,15] @ [15,tb] -> [64,tb] (f32 accumulation)
    h = jnp.dot(w1_ref[...], x, preferred_element_type=jnp.float32) + b1
    h = jnp.maximum(h, 0.0).astype(jnp.bfloat16)
    # Layer 2 + ReLU
    h = jnp.dot(w2_ref[...], h, preferred_element_type=jnp.float32) + b2
    h = jnp.maximum(h, 0.0).astype(jnp.bfloat16)
    # Layer 3 + ReLU
    h = jnp.dot(w3_ref[...], h, preferred_element_type=jnp.float32) + b3
    h = jnp.maximum(h, 0.0).astype(jnp.bfloat16)
    # Layer 4 (logits): [2,16] @ [16,tb] -> [2,tb]
    logits = jnp.dot(w4_ref[...], h, preferred_element_type=jnp.float32) + b4

    l0 = logits[0:1, :]
    l1 = logits[1:2, :]
    # softmax over the 2 classes == paired sigmoids of the logit difference:
    #   p0 = 1/(1+exp(l1-l0)),  p1 = 1/(1+exp(l0-l1))   (rows sum to 1 exactly)
    nd = jnp.concatenate([l1 - l0, l0 - l1], axis=0)      # [2, tb]
    o_ref[...] = 1.0 / (1.0 + jnp.exp(nd))


def _pack_biases(params):
    """Pack the four bias vectors into one (64, 4) f32 operand (column l = bias of layer l+1)."""
    b = jnp.zeros((_S1, 4), jnp.float32)
    b = b.at[:_S1, 0].set(params["b1"].reshape(_S1))
    b = b.at[:_S2, 1].set(params["b2"].reshape(_S2))
    b = b.at[:_S3, 2].set(params["b3"].reshape(_S3))
    b = b.at[:_OUT, 3].set(params["b4"].reshape(_OUT))
    return b


def _choose_tile(B, tile_b):
    """Pick a lane-tile (multiple of 128) and grid size; >= 2 steps when possible (v7x)."""
    b_pad0 = ((B + _LANE - 1) // _LANE) * _LANE
    tb = min(tile_b, b_pad0)
    tb = max(_LANE, (tb // _LANE) * _LANE)
    # v7x has 2 TensorCores: make sure the "parallel" batch axis has >= 2 steps
    # whenever the batch is big enough to split.
    if b_pad0 // tb < 2 and b_pad0 >= 2 * _LANE:
        tb = max(_LANE, ((b_pad0 // 2) // _LANE) * _LANE)
    n_tiles = -(-b_pad0 // tb)
    b_pad = n_tiles * tb
    return tb, n_tiles, b_pad


def small_nn_forward(x, params, *, tile_b=4096):
    """x: [B, 15] float32; params: PyTorch-layout weights (w: [out, in], b: [out]).

    Returns softmax probabilities [B, 2] in float32.
    """
    B = x.shape[0]
    tb, n_tiles, b_pad = _choose_tile(B, tile_b)

    # Feature-major input: [15, b_pad] bf16 (transpose/pad/cast are HBM-trivial).
    xt = jnp.pad(x.astype(jnp.bfloat16).T, ((0, 0), (0, b_pad - B)))

    # bf16 MXU operands (cast once per call; cache outside in a real pipeline).
    w1 = params["w1"].astype(jnp.bfloat16)   # [64, 15]
    w2 = params["w2"].astype(jnp.bfloat16)   # [32, 64]
    w3 = params["w3"].astype(jnp.bfloat16)   # [16, 32]
    w4 = params["w4"].astype(jnp.bfloat16)   # [ 2, 16]
    b_pack = _pack_biases(params)            # [64, 4] f32

    in_specs = [
        pl.BlockSpec((_IN, tb), lambda i: (0, i)),     # x: streamed over batch lanes
        pl.BlockSpec((_S1, _IN), lambda i: (0, 0)),    # weights: VMEM-resident
        pl.BlockSpec((_S2, _S1), lambda i: (0, 0)),
        pl.BlockSpec((_S3, _S2), lambda i: (0, 0)),
        pl.BlockSpec((_OUT, _S3), lambda i: (0, 0)),
        pl.BlockSpec((_S1, 4), lambda i: (0, 0)),      # packed biases
    ]
    out_specs = pl.BlockSpec((_OUT, tb), lambda i: (0, i))

    out_t = pl.pallas_call(
        _mlp_kernel,
        out_shape=jax.ShapeDtypeStruct((_OUT, b_pad), jnp.float32),
        grid=(n_tiles,),
        in_specs=in_specs,
        out_specs=out_specs,
        compiler_params=pltpu.CompilerParams(
            dimension_semantics=("parallel",),
        ),
    )(xt, w1, w2, w3, w4, b_pack)

    return out_t[:, :B].T


def init_params(key):
    """Deterministic init mimicking nn.Linear's U(-1/sqrt(fan_in), 1/sqrt(fan_in)).

    Weights are stored in PyTorch's native [out_features, in_features] layout
    (exactly what the feature-major kernel consumes)."""
    sizes = [(_IN, _S1), (_S1, _S2), (_S2, _S3), (_S3, _OUT)]
    params = {}
    for idx, (fan_in, fan_out) in enumerate(sizes, start=1):
        key, kw, kb = jax.random.split(key, 3)
        bound = 1.0 / math.sqrt(fan_in)
        params[f"w{idx}"] = jax.random.uniform(
            kw, (fan_out, fan_in), jnp.float32, -bound, bound)
        params[f"b{idx}"] = jax.random.uniform(
            kb, (fan_out,), jnp.float32, -bound, bound)
    return params


def reference_forward(x, params):
    """Pure-JAX f32 reference for sanity checking."""
    h = jnp.maximum(x @ params["w1"].T + params["b1"], 0.0)
    h = jnp.maximum(h @ params["w2"].T + params["b2"], 0.0)
    h = jnp.maximum(h @ params["w3"].T + params["b3"], 0.0)
    logits = h @ params["w4"].T + params["b4"]
    return jax.nn.softmax(logits, axis=-1)


if __name__ == "__main__":
    key = jax.random.PRNGKey(0)
    key, kx = jax.random.split(key)
    params = init_params(key)

    # Small demo batch (single 128-lane tile).
    B = 8
    x = jax.random.normal(kx, (B, _IN), jnp.float32)
    out = jax.block_until_ready(small_nn_forward(x, params))
    ref = reference_forward(x, params)
    assert out.shape == (B, _OUT)
    # bf16 MXU operands -> relaxed tolerance vs the f32 reference.
    assert jnp.allclose(out, ref, atol=2e-2), "mismatch vs reference (B=8)"
    assert jnp.allclose(jnp.sum(out, axis=-1), 1.0, atol=1e-4), "rows must sum to 1"

    # Exercise the multi-step (pipelined / megacore) path with a ragged tail:
    # B=300 -> 3 grid steps of 128 lanes, last tile partially padded.
    B2 = 300
    x2 = jax.random.normal(jax.random.PRNGKey(1), (B2, _IN), jnp.float32)
    out2 = jax.block_until_ready(small_nn_forward(x2, params))
    ref2 = reference_forward(x2, params)
    assert out2.shape == (B2, _OUT)
    assert jnp.allclose(out2, ref2, atol=2e-2), "mismatch vs reference (B=300)"
    assert jnp.allclose(jnp.sum(out2, axis=-1), 1.0, atol=1e-4), "rows must sum to 1"

    print("KERNEL_OK")
</pallas_src>

<mosaic_0001>
module attributes {stable_mosaic.version = 11 : i64} {
  func.func @_mlp_kernel(%arg0: i32, %arg1: memref<15x128xbf16, #tpu.memory_space<vmem>>, %arg2: memref<64x15xbf16, #tpu.memory_space<vmem>>, %arg3: memref<32x64xbf16, #tpu.memory_space<vmem>>, %arg4: memref<16x32xbf16, #tpu.memory_space<vmem>>, %arg5: memref<2x16xbf16, #tpu.memory_space<vmem>>, %arg6: memref<64x4xf32, #tpu.memory_space<vmem>>, %arg7: memref<2x128xf32, #tpu.memory_space<vmem>>) attributes {dimension_semantics = [#tpu.dimension_semantics<parallel>], iteration_bounds = array<i64: 1>, scalar_prefetch = 0 : i64, scratch_operands = 0 : i64, tpu.core_type = #tpu.core_type<tc>, window_params = [{transform_indices = @transform_0, window_bounds = array<i64: 15, 128>}, {pipeline_mode = #tpu.pipeline_mode<synchronous>, transform_indices = @transform_1, window_bounds = array<i64: 64, 15>}, {pipeline_mode = #tpu.pipeline_mode<synchronous>, transform_indices = @transform_2, window_bounds = array<i64: 32, 64>}, {pipeline_mode = #tpu.pipeline_mode<synchronous>, transform_indices = @transform_3, window_bounds = array<i64: 16, 32>}, {pipeline_mode = #tpu.pipeline_mode<synchronous>, transform_indices = @transform_4, window_bounds = array<i64: 2, 16>}, {pipeline_mode = #tpu.pipeline_mode<synchronous>, transform_indices = @transform_5, window_bounds = array<i64: 64, 4>}, {transform_indices = @transform_6, window_bounds = array<i64: 2, 128>}]} {
    %c0 = arith.constant 0 : index
    %c0_0 = arith.constant 0 : index
    %0 = vector.load %arg1[%c0, %c0_0] : memref<15x128xbf16, #tpu.memory_space<vmem>>, vector<15x128xbf16>
    %c0_1 = arith.constant 0 : index
    %c0_2 = arith.constant 0 : index
    %1 = vector.load %arg6[%c0_1, %c0_2] : memref<64x4xf32, #tpu.memory_space<vmem>>, vector<64x1xf32>
    %c0_3 = arith.constant 0 : index
    %c1 = arith.constant 1 : index
    %2 = vector.load %arg6[%c0_3, %c1] : memref<64x4xf32, #tpu.memory_space<vmem>>, vector<32x1xf32>
    %c0_4 = arith.constant 0 : index
    %c2 = arith.constant 2 : index
    %3 = vector.load %arg6[%c0_4, %c2] : memref<64x4xf32, #tpu.memory_space<vmem>>, vector<16x1xf32>
    %c0_5 = arith.constant 0 : index
    %c3 = arith.constant 3 : index
    %4 = vector.load %arg6[%c0_5, %c3] : memref<64x4xf32, #tpu.memory_space<vmem>>, vector<2x1xf32>
    %c0_6 = arith.constant 0 : index
    %c0_7 = arith.constant 0 : index
    %5 = vector.load %arg2[%c0_6, %c0_7] : memref<64x15xbf16, #tpu.memory_space<vmem>>, vector<64x15xbf16>
    %cst = arith.constant dense<0.000000e+00> : vector<64x128xf32>
    %6 = tpu.matmul %5, %0, %cst {dimension_numbers = #tpu.dot_dimension_numbers<[1], [0], [0], [1], [0, 0, 1, 1], [], []>} : vector<64x15xbf16>, vector<15x128xbf16>, vector<64x128xf32> -> vector<64x128xf32>
    %7 = vector.broadcast %1 : vector<64x1xf32> to vector<64x128xf32>
    %8 = arith.addf %6, %7 : vector<64x128xf32>
    %cst_8 = arith.constant 0.000000e+00 : f32
    %9 = vector.broadcast %cst_8 : f32 to vector<64x128xf32>
    %10 = arith.maximumf %8, %9 : vector<64x128xf32>
    %11 = arith.truncf %10 : vector<64x128xf32> to vector<64x128xbf16>
    %c0_9 = arith.constant 0 : index
    %c0_10 = arith.constant 0 : index
    %12 = vector.load %arg3[%c0_9, %c0_10] : memref<32x64xbf16, #tpu.memory_space<vmem>>, vector<32x64xbf16>
    %cst_11 = arith.constant dense<0.000000e+00> : vector<32x128xf32>
    %13 = tpu.matmul %12, %11, %cst_11 {dimension_numbers = #tpu.dot_dimension_numbers<[1], [0], [0], [1], [0, 0, 1, 1], [], []>} : vector<32x64xbf16>, vector<64x128xbf16>, vector<32x128xf32> -> vector<32x128xf32>
    %14 = vector.broadcast %2 : vector<32x1xf32> to vector<32x128xf32>
    %15 = arith.addf %13, %14 : vector<32x128xf32>
    %cst_12 = arith.constant 0.000000e+00 : f32
    %16 = vector.broadcast %cst_12 : f32 to vector<32x128xf32>
    %17 = arith.maximumf %15, %16 : vector<32x128xf32>
    %18 = arith.truncf %17 : vector<32x128xf32> to vector<32x128xbf16>
    %c0_13 = arith.constant 0 : index
    %c0_14 = arith.constant 0 : index
    %19 = vector.load %arg4[%c0_13, %c0_14] : memref<16x32xbf16, #tpu.memory_space<vmem>>, vector<16x32xbf16>
    %cst_15 = arith.constant dense<0.000000e+00> : vector<16x128xf32>
    %20 = tpu.matmul %19, %18, %cst_15 {dimension_numbers = #tpu.dot_dimension_numbers<[1], [0], [0], [1], [0, 0, 1, 1], [], []>} : vector<16x32xbf16>, vector<32x128xbf16>, vector<16x128xf32> -> vector<16x128xf32>
    %21 = vector.broadcast %3 : vector<16x1xf32> to vector<16x128xf32>
    %22 = arith.addf %20, %21 : vector<16x128xf32>
    %cst_16 = arith.constant 0.000000e+00 : f32
    %23 = vector.broadcast %cst_16 : f32 to vector<16x128xf32>
    %24 = arith.maximumf %22, %23 : vector<16x128xf32>
    %25 = arith.truncf %24 : vector<16x128xf32> to vector<16x128xbf16>
    %c0_17 = arith.constant 0 : index
    %c0_18 = arith.constant 0 : index
    %26 = vector.load %arg5[%c0_17, %c0_18] : memref<2x16xbf16, #tpu.memory_space<vmem>>, vector<2x16xbf16>
    %cst_19 = arith.constant dense<0.000000e+00> : vector<2x128xf32>
    %27 = tpu.matmul %26, %25, %cst_19 {dimension_numbers = #tpu.dot_dimension_numbers<[1], [0], [0], [1], [0, 0, 1, 1], [], []>} : vector<2x16xbf16>, vector<16x128xbf16>, vector<2x128xf32> -> vector<2x128xf32>
    %28 = vector.broadcast %4 : vector<2x1xf32> to vector<2x128xf32>
    %29 = arith.addf %27, %28 : vector<2x128xf32>
    %30 = vector.extract_strided_slice %29 {offsets = [0, 0], sizes = [1, 128], strides = [1, 1]} : vector<2x128xf32> to vector<1x128xf32>
    %31 = vector.extract_strided_slice %29 {offsets = [1, 0], sizes = [1, 128], strides = [1, 1]} : vector<2x128xf32> to vector<1x128xf32>
    %32 = arith.subf %31, %30 : vector<1x128xf32>
    %33 = arith.subf %30, %31 : vector<1x128xf32>
    %34 = tpu.concatenate %32, %33 in 0 : vector<1x128xf32>, vector<1x128xf32> -> vector<2x128xf32>
    %35 = math.exp %34 : vector<2x128xf32>
    %cst_20 = arith.constant 1.000000e+00 : f32
    %36 = vector.broadcast %cst_20 : f32 to vector<2x128xf32>
    %37 = arith.addf %36, %35 : vector<2x128xf32>
    %cst_21 = arith.constant 1.000000e+00 : f32
    %38 = vector.broadcast %cst_21 : f32 to vector<2x128xf32>
    %39 = arith.divf %38, %37 : vector<2x128xf32>
    %c0_22 = arith.constant 0 : index
    %c0_23 = arith.constant 0 : index
    %40 = vector.load %arg7[%c0_22, %c0_23] : memref<2x128xf32, #tpu.memory_space<vmem>>, vector<2x128xf32>
    tpu.vector_store %arg7[%c0_22, %c0_23], %39 {strides = array<i32>} : memref<2x128xf32, #tpu.memory_space<vmem>>, vector<2x128xf32>,
    return
  }
  func.func @transform_0(%arg0: i32) -> (i32, i32) {
    %c0_i32 = arith.constant 0 : i32
    %c0_i32_0 = arith.constant 0 : i32
    return %c0_i32, %arg0 : i32, i32
  }
  func.func @transform_1(%arg0: i32) -> (i32, i32) {
    %c0_i32 = arith.constant 0 : i32
    %c0_i32_0 = arith.constant 0 : i32
    %c0_i32_1 = arith.constant 0 : i32
    return %c0_i32, %c0_i32_0 : i32, i32
  }
  func.func @transform_2(%arg0: i32) -> (i32, i32) {
    %c0_i32 = arith.constant 0 : i32
    %c0_i32_0 = arith.constant 0 : i32
    %c0_i32_1 = arith.constant 0 : i32
    return %c0_i32, %c0_i32_0 : i32, i32
  }
  func.func @transform_3(%arg0: i32) -> (i32, i32) {
    %c0_i32 = arith.constant 0 : i32
    %c0_i32_0 = arith.constant 0 : i32
    %c0_i32_1 = arith.constant 0 : i32
    return %c0_i32, %c0_i32_0 : i32, i32
  }
  func.func @transform_4(%arg0: i32) -> (i32, i32) {
    %c0_i32 = arith.constant 0 : i32
    %c0_i32_0 = arith.constant 0 : i32
    %c0_i32_1 = arith.constant 0 : i32
    return %c0_i32, %c0_i32_0 : i32, i32
  }
  func.func @transform_5(%arg0: i32) -> (i32, i32) {
    %c0_i32 = arith.constant 0 : i32
    %c0_i32_0 = arith.constant 0 : i32
    %c0_i32_1 = arith.constant 0 : i32
    return %c0_i32, %c0_i32_0 : i32, i32
  }
  func.func @transform_6(%arg0: i32) -> (i32, i32) {
    %c0_i32 = arith.constant 0 : i32
    %c0_i32_0 = arith.constant 0 : i32
    return %c0_i32, %arg0 : i32, i32
  }
}

</mosaic_0001>

<bundles_post_ra>
// kernel: tpu_custom_call.1
= control target key start
LH: loop header
LB: loop body
LE: loop exit
PB: predicated region body
PF: predicated region fallthrough
CT: control target
= control target key end

     0   :  { %vm122_vm0 = vcmask 1046528   ;;  %vm123_vm1 = vcmask 1047552   ;;  %v566_v1 = vmov 65535   ;;  %vm109_vm2 = vcmask 121856   ;;  %s691_s0 = inlined_call_operand.vmem [shape: bf16[15,128], index: 0, kind: input, shape index: {}]   ;;  %s692_s1 = inlined_call_operand.vmem [shape: bf16[64,15], index: 1, kind: input, shape index: {}]   ;;  %s693_s2 = inlined_call_operand.vmem [shape: bf16[32,64], index: 2, kind: input, shape index: {}]   ;;  %s694_s3 = inlined_call_operand.vmem [shape: bf16[16,32], index: 3, kind: input, shape index: {}]   ;;  %s695_s4 = inlined_call_operand.vmem [shape: bf16[2,16], index: 4, kind: input, shape index: {}]   ;;  %s696_s5 = inlined_call_operand.vmem [shape: f32[64,4], index: 5, kind: input, shape index: {}]   ;;  %s697_s6 = inlined_call_operand.hbm [shape: f32[2,128], index: 6, kind: output, shape index: {}]  }
   0x1   :  { %v530_v0 = vld [vmem:[%s691_s0] sm:$0xff]   ;;  %v124_v2 = vsel %vm122_vm0, 4294967295, %v566_v1  ;;  %v532_v7 = vld [vmem:[%s692_s1 + $0x8] sm:$0xff]   ;;  %v567_v8 = vmov 0   ;;  %v29_v9 = vld [vmem:[%s696_s5 + $0x10] sm:$0xff] }
   0x2   :  { %v531_v3 = vld [vmem:[%s692_s1] sm:$0xff]   ;;  %v125_v4 = vsel %vm123_vm1, %v124_v2, 0  ;;  %522 = vset.pattern.permute.xlu0 %v567_v8  ;;  %v533_v10 = vld [vmem:[%s692_s1 + $0x10] sm:$0xff]   ;;  %v634_v11 = vld [vmem:[%s696_s5 + $0x8] sm:$0xff]  ;;  %523 = vset.pattern.permute.xlu1 %v567_v8 }
   0x3   :  { %v127_v5 = vand.u32 %v530_v0, %v125_v4  ;;  %480 = vmatprep.mubr.msk.bf16.mxu0 %vm109_vm2, %v531_v3  ;;  %v619_v6 = vld [vmem:[%s696_s5] sm:$0xff]  ;;  %56 = vperm.xlu1 %523, %v29_v9   ;;  %v30_v12 = vld [vmem:[%s696_s5 + $0x18] sm:$0xff] }
   0x4   :  { %46 = vperm.xlu0 %522, %v619_v6  }
   0x5   :  { %478 = vmatprep.subr.bf16.mxu0 %v127_v5 }
   0x6   :  { %479 = vmatpush3.bf16.msra.mxu0 %v127_v5 }
   0x9   :  { %481 = vmatmul.mubr.msk.bf16.vlgmr.msra.gmra.mrb[0].mxu0 %vm109_vm2, %v532_v7 }
   0xa   :  { %11 = vsyncpa [#allocation3], 0  ;;  %484 = vmatprep.mubr.msk.bf16.mxu0 %vm109_vm2, %v533_v10  ;;  %51 = vperm.xlu0 %522, %v634_v11   ;;  %v31_v13 = vld [vmem:[%s696_s5 + $0x20] sm:$0xff]  ;;  %v534_v14 = vld [vmem:[%s692_s1 + $0x18] sm:$0xff]   ;;  %vm236_vm3 = vcmask 523264   ;;  %v568_v19 = vmov 1  }
   0xb   :  { %61 = vperm.xlu1 %523, %v30_v12   ;;  %v32_v15 = vld [vmem:[%s696_s5 + $0x28] sm:$0xff]  ;;  %v33_v16 = vld [vmem:[%s696_s5 + $0x30] sm:$0xff]  ;;  %v34_v17 = vld [vmem:[%s696_s5 + $0x38] sm:$0xff]  ;;  %v569_v57 = vmov 0.0   ;;  %vm570_vm4 = vmmov 0   ;;  %v571_v58 = vmov 2  }
   0xc   :  { %v535_v18 = vld [vmem:[%s693_s2] sm:$0xff]   ;;  %v536_v56 = vld [vmem:[%s693_s2 + $0x8] sm:$0xff]   ;;  %500 = vmatprep.subr.bf16.mxu0 %v569_v57  ;;  %vm313_vm5 = vcmask 261120   ;;  %vm367_vm6 = vcmask 130048   ;;  %vm424_vm7 = vcmask 1040384  }
   0xd   :  { %496 = vmatprep.mubr.msk.bf16.mxu1 %vm236_vm3, %v535_v18 }
   0xe   :  { %66 = vperm.xlu0 %522, %v31_v13  }
   0xf   :  { %71 = vperm.xlu1 %523, %v32_v15   ;;  %v572_v15 = vmov 3  }
  0x11   :  { %485 = vmatmul.mubr.msk.bf16.gmra.mrb[4].mxu0 %vm109_vm2, %v534_v14  ;;  %v35_v14 = vld [vmem:[%s696_s5] sm:$0x3] }
  0x12   :  { %76 = vperm.xlu0 %522, %v33_v16   ;;  %504 = vmatprep.mubr.msk.bf16.mxu0 %vm570_vm4, %v569_v57 }
  0x13   :  { %81 = vperm.xlu1 %523, %v34_v17  }
  0x16   :  { %524 = vset.pattern.permute.xlu0 %v568_v19 }
  0x17   :  { %525 = vset.pattern.permute.xlu1 %v568_v19  ;;  %211 = vperm.xlu0 %524, %v619_v6  }
  0x18   :  { %215 = vperm.xlu1 %525, %v634_v11  }
  0x1b   :  { %223 = vperm.xlu0 %524, %v30_v12  }
  0x1c   :  { %219 = vperm.xlu1 %525, %v29_v9  }
  0x1f   :  { %527 = vset.pattern.permute.xlu0 %v571_v58 }
  0x20   :  { %526 = vset.pattern.permute.xlu1 %v571_v58  ;;  %305 = vperm.xlu0 %527, %v634_v11   ;;  %v537_v11 = vld [vmem:[%s694_s3] sm:$0xff]  }
  0x21   :  { %301 = vperm.xlu1 %526, %v619_v6  }
  0x24   :  { %529 = vset.pattern.permute.xlu0 %v572_v15 }
  0x25   :  { %528 = vset.pattern.permute.xlu1 %v572_v15 }
  0x26   :  { %364 = vperm.xlu1 %528, %v35_v14  }
  0x82   :  { %v57_v21 = vpop.permute.xlu1 %56 }
  0x83   :  { %v47_v20 = vpop.permute.xlu0 %46 }
  0x89   :  { %v52_v22 = vpop.permute.xlu0 %51 }
  0x8a   :  { %v62_v23 = vpop.permute.xlu1 %61 }
  0x8d   :  { %v67_v27 = vpop.permute.xlu0 %66 }
  0x8e   :  { %v72_v32 = vpop.permute.xlu1 %71 }
  0x91   :  { %v77_v39 = vpop.permute.xlu0 %76 }
  0x92   :  { %v82_v44 = vpop.permute.xlu1 %81 }
  0x96   :  { %v212_v60 = vpop.permute.xlu0 %211 }
  0x97   :  { %v216_v59 = vpop.permute.xlu1 %215 }
  0x9a   :  { %v224_v63 = vpop.permute.xlu0 %223 }
  0x9b   :  { %v220_v61 = vpop.permute.xlu1 %219 }
  0x9f   :  { %v306_v18 = vpop.permute.xlu0 %305 }
  0xa0   :  { %v302_v16 = vpop.permute.xlu1 %301 }
  0xdc   :  { %v482_v24 = vpop.f32.mrb[0].mxu0 }
  0xdd   :  { %v172_v25 = vadd.f32 %v482_v24, %v57_v21  ;;  %v163_v26 = vpop.f32.mrb[1].mxu0 }
  0xde   :  { %v164_v28 = vadd.f32 %v163_v26, %v47_v20  ;;  %v483_v29 = vpop.f32.mrb[2].mxu0 }
  0xdf   :  { %v175_v30 = vadd.f32 %v483_v29, %v62_v23  ;;  %v166_v31 = vpop.f32.mrb[3].mxu0  ;;  %v196_v34 = vmax.f32 %v172_v25, 0.0 }
  0xe0   :  { %v167_v33 = vadd.f32 %v166_v31, %v52_v22  ;;  %v194_v36 = vmax.f32 %v164_v28, 0.0  ;;  %v365_v28 = vpop.permute.xlu1 %364 }
  0xe1   :  { %v197_v35 = vmax.f32 %v175_v30, 0.0 }
  0xe2   :  { %v195_v37 = vmax.f32 %v167_v33, 0.0 }
  0xe3   :  { %v203_v38 = vpack.c.bf16 %v197_v35, %v196_v34 }
  0xe4   :  { %v486_v40 = vpop.f32.mrb[4].mxu0  ;;  %v202_v41 = vpack.c.bf16 %v195_v37, %v194_v36 }
  0xe5   :  { %v188_v42 = vadd.f32 %v486_v40, %v77_v39  ;;  %v179_v43 = vpop.f32.mrb[5].mxu0 }
  0xe6   :  { %v180_v45 = vadd.f32 %v179_v43, %v67_v27  ;;  %v487_v46 = vpop.f32.mrb[6].mxu0  ;;  %488 = vmatprep.subr.bf16.mxu1 %v202_v41  ;;  %v361_v27 = vld [vmem:[%s695_s4] sm:$0x1]  ;;  %s573_s4 = smov [#allocation2]  }
  0xe7   :  { %v191_v47 = vadd.f32 %v487_v46, %v82_v44  ;;  %v182_v48 = vpop.f32.mrb[7].mxu0  ;;  %489 = vmatpush3.bf16.msra.mxu1 %v202_v41  ;;  %v200_v50 = vmax.f32 %v188_v42, 0.0  ;;  %s438_s5 = sshll.u32 %s573_s4, 4  ;;  %s439_s5 = int_to_ptr.vmem [resolvable:$true] %s438_s5 }
  0xe8   :  { %v183_v49 = vadd.f32 %v182_v48, %v72_v32  ;;  %490 = vmatprep.subr.bf16.mxu1 %v203_v38  ;;  %v198_v52 = vmax.f32 %v180_v45, 0.0  ;;  %s542_s28 = scalar_lea.vmem %s439_s5, 32  ;;  %p547_p1 = scmp.lt.s32.totalorder %s439_s5, %s439_s5 }
  0xe9   :  { %v201_v51 = vmax.f32 %v191_v47, 0.0  ;;  %p543_p0 = scmp.ne.s32.totalorder %s439_s5, %s542_s28  ;;  %p548_p2 = scmp.lt.s32.totalorder %s542_s28, %s542_s28 }
  0xea   :  { %v199_v53 = vmax.f32 %v183_v49, 0.0 }
  0xeb   :  { %v205_v54 = vpack.c.bf16 %v201_v51, %v200_v50  ;;  %491 = vmatpush3.bf16.msra.mxu1 %v203_v38  ;;  %p549_p3 = por %p548_p2, %p547_p1 }
  0xec   :  { %v204_v55 = vpack.c.bf16 %v199_v53, %v198_v52 }
  0xed   :  { %p550_p4 = pnand %p549_p3, %p543_p0 }
  0xee   :  { %492 = vmatprep.subr.bf16.mxu1 %v204_v55 }
  0xef   :  { %493 = vmatpush3.bf16.msra.mxu1 %v204_v55 }
  0xf0   :  { %494 = vmatprep.subr.bf16.mxu1 %v205_v54 }
  0xf3   :  { %495 = vmatpush3.bf16.msra.mxu1 %v205_v54 }
  0xf4   :  { %508 = vmatprep.subr.bf16.mxu1 %v569_v57 }
  0xf6   :  { %497 = vmatmul.mubr.msk.bf16.vlgmr.msra.gmra.mrb[0].mxu1 %vm236_vm3, %v536_v56 }
  0xf7   :  { %510 = vmatprep.mubr.msk.bf16.mxu1 %vm570_vm4, %v569_v57 }
 0x1c9   :  { %v498_v62 = vpop.f32.mrb[0].mxu1 }
 0x1ca   :  { %v286_v0 = vadd.f32 %v498_v62, %v220_v61  ;;  %v277_v1 = vpop.f32.mrb[1].mxu1 }
 0x1cb   :  { %v278_v2 = vadd.f32 %v277_v1, %v212_v60  ;;  %v499_v3 = vpop.f32.mrb[2].mxu1 }
 0x1cc   :  { %v289_v4 = vadd.f32 %v499_v3, %v224_v63  ;;  %v280_v5 = vpop.f32.mrb[3].mxu1  ;;  %v294_v8 = vmax.f32 %v286_v0, 0.0 }
 0x1cd   :  { %v281_v7 = vadd.f32 %v280_v5, %v216_v59  ;;  %v292_v10 = vmax.f32 %v278_v2, 0.0 }
 0x1ce   :  { %v295_v9 = vmax.f32 %v289_v4, 0.0 }
 0x1cf   :  { %v293_v12 = vmax.f32 %v281_v7, 0.0 }
 0x1d0   :  { %v297_v13 = vpack.c.bf16 %v295_v9, %v294_v8 }
 0x1d1   :  { %v296_v6 = vpack.c.bf16 %v293_v12, %v292_v10 }
 0x1d3   :  { %501 = vmatpush3.bf16.msra.mxu0 %v296_v6 }
 0x1d4   :  { %502 = vmatprep.subr.bf16.mxu0 %v569_v57 }
 0x1d7   :  { %503 = vmatpush3.bf16.msra.mxu0 %v297_v13 }
 0x1da   :  { %505 = vmatmul.mubr.msk.bf16.vlgmr.msra.gmra.mrb[8].mxu0 %vm313_vm5, %v537_v11 }
 0x2ad   :  { %v351_v17 = vpop.f32.mrb[8].mxu0 }
 0x2ae   :  { %v506_v19 = vpop.f32.mrb[9].mxu0  ;;  %v352_v20 = vadd.f32 %v351_v17, %v302_v16 }
 0x2af   :  { %v354_v21 = vpop.f32.mrb[10].mxu0 }
 0x2b0   :  { %v355_v22 = vadd.f32 %v354_v21, %v306_v18  ;;  %v507_v23 = vpop.f32.mrb[11].mxu0  ;;  %v358_v24 = vmax.f32 %v352_v20, 0.0 }
 0x2b2   :  { %v359_v25 = vmax.f32 %v355_v22, 0.0 }
 0x2b4   :  { %v360_v26 = vpack.c.bf16 %v359_v25, %v358_v24 }
 0x2b6   :  { %509 = vmatpush3.bf16.msra.mxu1 %v360_v26 }
 0x2b9   :  { %511 = vmatmul.mubr.msk.bf16.vlgmr.msra.gmra.mrb[4].mxu1 %vm367_vm6, %v361_v27 }
 0x38c   :  { %v405_v29 = vpop.f32.mrb[4].mxu1 }
 0x38d   :  { %v406_v30 = vadd.f32 %v405_v29, %v365_v28  ;;  %v512_v31 = vpop.f32.mrb[5].mxu1 }
 0x38e   :  { %v408_v32 = vpop.f32.mrb[6].mxu1 }
 0x38f   :  { %v412_v33 = vrot.slane %v406_v30, 7  ;;  %v415_v34 = vrot.slane %v406_v30, 1  ;;  %v513_v35 = vpop.f32.mrb[7].mxu1 }
 0x391   :  { %v414_v36 = vsub.f32 %v406_v30, %v412_v33  ;;  %v417_v37 = vsub.f32 %v406_v30, %v415_v34 }
 0x393   :  { %v419_v38 = vrot.slane %v414_v36, 1  ;;  %v422_v39 = vrot.slane %v417_v37, 7 }
 0x395   :  { %v425_v40 = vsel %vm424_vm7, %v419_v38, %v422_v39 }
 0x396   :  { %v426_v41 = vmul.f32 1.442695, %v425_v40 }
 0x398   :  { %538 = vpow2.f32 %v426_v41 }
 0x3a2   :  { %v539_v42 = vpop.eup %538 }
 0x3a3   :  { %v428_v43 = vadd.f32 1.0, %v539_v42 }
 0x3a5   :  { %540 = vrcp.f32 %v428_v43 }
 0x3af   :  { %v541_v44 = vpop.eup %540 }
 0x3b0   :  { %431 = vst [vmem:[#allocation2] sm:$0x3] %v541_v44 }
 0x3b1   :  { %553 = shalt.err (!%p550_p4)
}
 0x3b2   :  { %s554_s7 = scalar_lea.hbm %s697_s6, 32 }
 0x3b3   :  { %p555_p5 = scmp.ne.s32.totalorder %s697_s6, %s554_s7  ;;  %p558_p6 = scmp.lt.u32.totalorder %s554_s7, %s697_s6 }
 0x3b5   :  { %p560_p7 = pnand %p558_p6, %p555_p5 }
 0x3b7   :  { %563 = shalt.err (!%p560_p7)
}
 0x3b8   :  { %441 = dma.vmem_to_hbm [thread:$0]  %s439_s5, 32, %s697_s6, [#allocation3]  }
 0x3b9   :  { %564 = dma.done.wait [#allocation3], 32  }
 0x3ba   :  { %565 = vsyncadd [#allocation3], 4294967264 }
 0x3bb   :  { %445 = vsyncpa [#allocation3], 1 }

</bundles_post_ra>
